<compile_context>
chip_gen: v7x
topology: tpu7x:2x2x1
jax: 0.10.0
libtpu: 0.0.40
codegen_flags: <defaults>
</compile_context>

<pallas_src>
import numpy as np
import jax
import jax.numpy as jnp
from jax import lax
from jax.experimental import pallas as pl
from jax.experimental.pallas import tpu as pltpu


def _round_up(n, m):
    return ((n + m - 1) // m) * m


def _linear_nobias_kernel(x_ref, w_ref, o_ref, acc_ref):
    # x_ref : (TM, TK) bf16 block of the input  (batch, semantic_dim)
    # w_ref : (TN, TK) bf16 block of the weight (classes, semantic_dim)
    # o_ref : (TM, TN) f32 output block
    # acc_ref: (TM, TN) f32 VMEM accumulator, resident across the K axis
    @pl.when(pl.program_id(2) == 0)
    def _init():
        acc_ref[...] = jnp.zeros_like(acc_ref)

    # Contract the last dim of both operands: x @ w.T without a transpose op.
    acc_ref[...] += lax.dot_general(
        x_ref[...],
        w_ref[...],
        dimension_numbers=(((1,), (1,)), ((), ())),
        preferred_element_type=jnp.float32,
    )

    @pl.when(pl.program_id(2) == pl.num_programs(2) - 1)
    def _finalize():
        o_ref[...] = acc_ref[...]


def unit_classifier_forward(x, weight):
    """x: (B, D) float, weight: (C, D) float (rows are L2-normalized attributes).

    Returns (B, C) float32 = x @ weight.T, computed by a tiled Pallas kernel.
    """
    B, D = x.shape
    C, Dw = weight.shape
    assert D == Dw, "semantic_dim mismatch between x and weight"

    # bf16 operands, f32 accumulation (MXU-native on v5e/v6e/v7x).
    x_bf = x.astype(jnp.bfloat16)
    w_bf = weight.astype(jnp.bfloat16)

    # --- pad to MXU/lane-friendly shapes (zero padding is exact) ------------
    TM_CAP, TN_CAP, TK_CAP = 256, 512, 512   # conservative; fits v7x VMEM easily

    B_pad = _round_up(B, 16)                  # sublane (bf16 packs 16 rows/vreg)
    if B_pad > TM_CAP:
        TM = TM_CAP
        B_pad = _round_up(B_pad, TM)
    else:
        TM = B_pad

    C_pad = _round_up(C, 128)                 # lane-dense output stores
    if C_pad > TN_CAP:
        TN = TN_CAP
        C_pad = _round_up(C_pad, TN)
    else:
        TN = C_pad

    D_pad = _round_up(D, 128)                 # lane dim of both operands
    if D_pad > TK_CAP:
        TK = TK_CAP
        D_pad = _round_up(D_pad, TK)
    else:
        TK = D_pad

    x_p = jnp.pad(x_bf, ((0, B_pad - B), (0, D_pad - D)))
    w_p = jnp.pad(w_bf, ((0, C_pad - C), (0, D_pad - D)))

    grid = (B_pad // TM, C_pad // TN, D_pad // TK)

    cost = pl.CostEstimate(
        flops=2 * B_pad * C_pad * D_pad,
        bytes_accessed=(B_pad * D_pad + C_pad * D_pad) * 2 + B_pad * C_pad * 4,
        transcendentals=0,
    )

    out_pad = pl.pallas_call(
        _linear_nobias_kernel,
        out_shape=jax.ShapeDtypeStruct((B_pad, C_pad), jnp.float32),
        grid=grid,
        in_specs=[
            pl.BlockSpec((TM, TK), lambda i, j, k: (i, k)),   # x tile
            pl.BlockSpec((TN, TK), lambda i, j, k: (j, k)),   # weight tile (C, D)
        ],
        out_specs=pl.BlockSpec((TM, TN), lambda i, j, k: (i, j)),
        scratch_shapes=[pltpu.VMEM((TM, TN), jnp.float32)],
        compiler_params=pltpu.CompilerParams(
            dimension_semantics=("parallel", "parallel", "arbitrary"),
        ),
        cost_estimate=cost,
    )(x_p, w_p)

    # Slice back to the logical (B, C) logits.
    return out_pad[:B, :C]


def build_unit_classifier_weight(attributes, classes):
    """Replicates UnitClassifier.__init__: stack L2-normalized attribute vectors."""
    mat = jnp.stack(
        [jnp.asarray(attributes[c], dtype=jnp.float32) for c in classes], axis=0
    )  # (num_classes, semantic_dim)
    norms = jnp.linalg.norm(mat, ord=2, axis=1, keepdims=True)
    return mat / norms


if __name__ == "__main__":
    # Small, deterministic synthetic setup consistent with the module:
    # semantic_dim=32, 10 classes, batch of 8 semantic embeddings.
    semantic_dim = 32
    classes = [f"class_{i}" for i in range(10)]
    batch = 8

    key = jax.random.PRNGKey(0)
    k_attr, k_x = jax.random.split(key)

    # Deterministic per-class attribute vectors (the "attributes" dict in __init__).
    attr_mat = jax.random.normal(k_attr, (len(classes), semantic_dim), dtype=jnp.float32)
    attributes = {c: np.asarray(attr_mat[i]) for i, c in enumerate(classes)}

    weight = build_unit_classifier_weight(attributes, classes)  # (C, D)
    x = jax.random.normal(k_x, (batch, semantic_dim), dtype=jnp.float32)

    out = unit_classifier_forward(x, weight)
    out = jax.block_until_ready(out)

    # Reference check against plain-JAX linear (same math as nn.Linear, no bias).
    # Tolerance loosened because operands are rounded to bf16 (f32 accumulation).
    ref = x @ weight.T
    np.testing.assert_allclose(np.asarray(out), np.asarray(ref), rtol=2e-2, atol=2e-2)

    assert out.shape == (batch, len(classes))
    print("KERNEL_OK")
</pallas_src>

<mosaic_0001>
module attributes {stable_mosaic.version = 11 : i64} {
  func.func @_linear_nobias_kernel(%arg0: i32, %arg1: i32, %arg2: i32, %arg3: memref<16x128xbf16, #tpu.memory_space<vmem>>, %arg4: memref<128x128xbf16, #tpu.memory_space<vmem>>, %arg5: memref<16x128xf32, #tpu.memory_space<vmem>>, %arg6: memref<16x128xf32, #tpu.memory_space<vmem>>) attributes {dimension_semantics = [#tpu.dimension_semantics<parallel>, #tpu.dimension_semantics<parallel>, #tpu.dimension_semantics<arbitrary>], iteration_bounds = array<i64: 1, 1, 1>, scalar_prefetch = 0 : i64, scratch_operands = 1 : i64, tpu.core_type = #tpu.core_type<tc>, window_params = [{transform_indices = @transform_0, window_bounds = array<i64: 16, 128>}, {transform_indices = @transform_1, window_bounds = array<i64: 128, 128>}, {transform_indices = @transform_2, window_bounds = array<i64: 16, 128>}]} {
    %c0_i32 = arith.constant 0 : i32
    %0 = arith.cmpi eq, %arg2, %c0_i32 : i32
    %1 = arith.extui %0 : i1 to i32
    %c0_i32_0 = arith.constant 0 : i32
    %2 = arith.cmpi ne, %1, %c0_i32_0 : i32
    scf.if %2 {
      %cst_10 = arith.constant 0.000000e+00 : f32
      %12 = vector.broadcast %cst_10 : f32 to vector<16x128xf32>
      %c0_11 = arith.constant 0 : index
      %c0_12 = arith.constant 0 : index
      %13 = vector.load %arg6[%c0_11, %c0_12] : memref<16x128xf32, #tpu.memory_space<vmem>>, vector<16x128xf32>
      tpu.vector_store %arg6[%c0_11, %c0_12], %12 {strides = array<i32>} : memref<16x128xf32, #tpu.memory_space<vmem>>, vector<16x128xf32>,
    } else {
    }
    %c0 = arith.constant 0 : index
    %c0_1 = arith.constant 0 : index
    %3 = vector.load %arg6[%c0, %c0_1] : memref<16x128xf32, #tpu.memory_space<vmem>>, vector<16x128xf32>
    %c0_2 = arith.constant 0 : index
    %c0_3 = arith.constant 0 : index
    %4 = vector.load %arg3[%c0_2, %c0_3] : memref<16x128xbf16, #tpu.memory_space<vmem>>, vector<16x128xbf16>
    %c0_4 = arith.constant 0 : index
    %c0_5 = arith.constant 0 : index
    %5 = vector.load %arg4[%c0_4, %c0_5] : memref<128x128xbf16, #tpu.memory_space<vmem>>, vector<128x128xbf16>
    %cst = arith.constant dense<0.000000e+00> : vector<16x128xf32>
    %6 = tpu.matmul %4, %5, %cst {dimension_numbers = #tpu.dot_dimension_numbers<[1], [1], [0], [0], [0, 0, 1, 0], [], []>} : vector<16x128xbf16>, vector<128x128xbf16>, vector<16x128xf32> -> vector<16x128xf32>
    %7 = arith.addf %3, %6 : vector<16x128xf32>
    %c0_6 = arith.constant 0 : index
    %c0_7 = arith.constant 0 : index
    %8 = vector.load %arg6[%c0_6, %c0_7] : memref<16x128xf32, #tpu.memory_space<vmem>>, vector<16x128xf32>
    tpu.vector_store %arg6[%c0_6, %c0_7], %7 {strides = array<i32>} : memref<16x128xf32, #tpu.memory_space<vmem>>, vector<16x128xf32>,
    %c0_i32_8 = arith.constant 0 : i32
    %9 = arith.cmpi eq, %arg2, %c0_i32_8 : i32
    %10 = arith.extui %9 : i1 to i32
    %c0_i32_9 = arith.constant 0 : i32
    %11 = arith.cmpi ne, %10, %c0_i32_9 : i32
    scf.if %11 {
      %c0_10 = arith.constant 0 : index
      %c0_11 = arith.constant 0 : index
      %12 = vector.load %arg6[%c0_10, %c0_11] : memref<16x128xf32, #tpu.memory_space<vmem>>, vector<16x128xf32>
      %c0_12 = arith.constant 0 : index
      %c0_13 = arith.constant 0 : index
      %13 = vector.load %arg5[%c0_12, %c0_13] : memref<16x128xf32, #tpu.memory_space<vmem>>, vector<16x128xf32>
      tpu.vector_store %arg5[%c0_12, %c0_13], %12 {strides = array<i32>} : memref<16x128xf32, #tpu.memory_space<vmem>>, vector<16x128xf32>,
    } else {
    }
    return
  }
  func.func @transform_0(%arg0: i32, %arg1: i32, %arg2: i32) -> (i32, i32) {
    %c0_i32 = arith.constant 0 : i32
    return %arg0, %arg2 : i32, i32
  }
  func.func @transform_1(%arg0: i32, %arg1: i32, %arg2: i32) -> (i32, i32) {
    %c0_i32 = arith.constant 0 : i32
    return %arg1, %arg2 : i32, i32
  }
  func.func @transform_2(%arg0: i32, %arg1: i32, %arg2: i32) -> (i32, i32) {
    %c0_i32 = arith.constant 0 : i32
    return %arg0, %arg1 : i32, i32
  }
}

</mosaic_0001>

<bundles_post_ra>
// kernel: tpu_custom_call.1
= control target key start
LH: loop header
LB: loop body
LE: loop exit
PB: predicated region body
PF: predicated region fallthrough
CT: control target
= control target key end

     0   :  { %7 = vsyncpa [#allocation4], 0  ;;  %s379_s0 = inlined_call_operand.hbm [shape: bf16[16,128], index: 0, kind: input, shape index: {}]   ;;  %s380_s1 = inlined_call_operand.hbm [shape: bf16[128,128], index: 1, kind: input, shape index: {}]   ;;  %s381_s2 = inlined_call_operand.hbm [shape: f32[16,128], index: 2, kind: output, shape index: {}]  }
   0x1   :  { %8 = vsyncpa [#allocation7], 0 }
   0x2   :  { %9 = vsyncpa [#allocation5], 0  ;;  %s319_s9 = smov [#allocation3]   ;;  %s247_s13 = scalar_lea.hbm %s379_s0, 128 }
   0x3   :  { %s15_s10 = sshll.u32 %s319_s9, 4  ;;  %p248_p0 = scmp.ne.s32.totalorder %s379_s0, %s247_s13  ;;  %s16_s10 = int_to_ptr.vmem [resolvable:$true] %s15_s10 }
   0x4   :  { %p251_p1 = scmp.lt.u32.totalorder %s247_s13, %s379_s0 }
   0x6   :  { %p253_p2 = pnand %p251_p1, %p248_p0 }
   0x8   :  { %256 = shalt.err (!%p253_p2)
}
   0x9   :  { %s257_s18 = scalar_lea.vmem %s16_s10, 128  ;;  %p262_p4 = scmp.lt.s32.totalorder %s16_s10, %s16_s10 }
   0xa   :  { %p258_p3 = scmp.ne.s32.totalorder %s16_s10, %s257_s18  ;;  %p263_p5 = scmp.lt.s32.totalorder %s257_s18, %s257_s18 }
   0xc   :  { %p264_p6 = por %p263_p5, %p262_p4 }
   0xe   :  { %p265_p7 = pnand %p264_p6, %p258_p3 }
  0x10   :  { %268 = shalt.err (!%p265_p7)
}
  0x11   :  { %s320_s19 = smov 64   ;;  %s321_s20 = smov 4  }
  0x12   :  { %21 = dma.hbm_to_vmem [thread:$0]  %s379_s0, 128, %s16_s10, [#allocation4], %s320_s19, %s320_s19, %s321_s20  }
  0x13   :  { %s322_s23 = smov [#allocation6]   ;;  %s269_s27 = scalar_lea.hbm %s380_s1, 1024 }
  0x14   :  { %s27_s24 = sshll.u32 %s322_s23, 4  ;;  %p270_p8 = scmp.ne.s32.totalorder %s380_s1, %s269_s27  ;;  %s28_s24 = int_to_ptr.vmem [resolvable:$true] %s27_s24 }
  0x15   :  { %p273_p9 = scmp.lt.u32.totalorder %s269_s27, %s380_s1 }
  0x17   :  { %p275_p10 = pnand %p273_p9, %p270_p8 }
  0x19   :  { %278 = shalt.err (!%p275_p10)
}
  0x1a   :  { %s279_s4 = scalar_lea.vmem %s28_s24, 1024  ;;  %p284_p12 = scmp.lt.s32.totalorder %s28_s24, %s28_s24 }
  0x1b   :  { %p280_p11 = scmp.ne.s32.totalorder %s28_s24, %s279_s4  ;;  %p285_p13 = scmp.lt.s32.totalorder %s279_s4, %s279_s4 }
  0x1d   :  { %p286_p0 = por %p285_p13, %p284_p12 }
  0x1f   :  { %p287_p1 = pnand %p286_p0, %p280_p11 }
  0x21   :  { %290 = shalt.err (!%p287_p1)
}
  0x22   :  { %33 = dma.hbm_to_vmem [thread:$0]  %s380_s1, 1024, %s28_s24, [#allocation7], %s320_s19, %s320_s19, %s321_s20  }
  0x23   :  { %313 = dma.done.wait [#allocation4], 128  }
  0x24   :  { %314 = vsyncadd [#allocation4], 4294967168 }
  0x25   :  { %315 = dma.done.wait [#allocation7], 1024  }
  0x26   :  { %316 = vsyncadd [#allocation7], 4294966272  ;;  %v323_v0 = vmov 0.0   ;;  %vm324_vm0 = vmmov 0   ;;  %v238_v1 = vld [vmem:[#allocation6] sm:$0xff]   ;;  %v239_v2 = vld [vmem:[#allocation6 + $0x8] sm:$0xff]  }
  0x27   :  { %209 = vmatprep.subr.bf16.mxu0 %v323_v0  ;;  %225 = vmatprep.mubr.msk.bf16.mxu0 %vm324_vm0, %v323_v0  ;;  %v240_v3 = vld [vmem:[#allocation6 + $0x10] sm:$0xff]   ;;  %v241_v4 = vld [vmem:[#allocation6 + $0x18] sm:$0xff]   ;;  %v242_v5 = vld [vmem:[#allocation6 + $0x20] sm:$0xff]   ;;  %s325_s1 = smov [#allocation8]  }
  0x28   :  { %210 = vmatpush3.bf16.xpose.msra.mxu0 %v238_v1  ;;  %v243_v6 = vld [vmem:[#allocation6 + $0x28] sm:$0xff]   ;;  %v244_v7 = vld [vmem:[#allocation6 + $0x30] sm:$0xff]   ;;  %v245_v8 = vld [vmem:[#allocation6 + $0x38] sm:$0xff]   ;;  %s178_s6 = sshll.u32 %s325_s1, 4  ;;  %s179_s6 = int_to_ptr.vmem [resolvable:$true] %s178_s6 }
  0x29   :  { %211 = vmatprep.subr.bf16.mxu0 %v323_v0  ;;  %v246_v9 = vld [vmem:[#allocation3] sm:$0xff]   ;;  %s291_s7 = scalar_lea.vmem %s179_s6, 256  ;;  %p296_p3 = scmp.lt.s32.totalorder %s179_s6, %s179_s6 }
  0x2a   :  { %p292_p2 = scmp.ne.s32.totalorder %s179_s6, %s291_s7  ;;  %p297_p4 = scmp.lt.s32.totalorder %s291_s7, %s291_s7 }
  0x2c   :  { %p298_p5 = por %p297_p4, %p296_p3 }
  0x2e   :  { %p299_p6 = pnand %p298_p5, %p292_p2 }
  0x30   :  { %212 = vmatpush3.bf16.xpose.msra.mxu0 %v239_v2 }
  0x31   :  { %213 = vmatprep.subr.bf16.mxu0 %v323_v0 }
  0x38   :  { %214 = vmatpush3.bf16.xpose.msra.mxu0 %v240_v3 }
  0x39   :  { %215 = vmatprep.subr.bf16.mxu0 %v323_v0 }
  0x40   :  { %216 = vmatpush3.bf16.xpose.msra.mxu0 %v241_v4 }
  0x41   :  { %217 = vmatprep.subr.bf16.mxu0 %v323_v0 }
  0x48   :  { %218 = vmatpush3.bf16.xpose.msra.mxu0 %v242_v5 }
  0x49   :  { %219 = vmatprep.subr.bf16.mxu0 %v323_v0 }
  0x50   :  { %220 = vmatpush3.bf16.xpose.msra.mxu0 %v243_v6 }
  0x51   :  { %221 = vmatprep.subr.bf16.mxu0 %v323_v0 }
  0x58   :  { %222 = vmatpush3.bf16.xpose.msra.mxu0 %v244_v7 }
  0x59   :  { %223 = vmatprep.subr.bf16.mxu0 %v323_v0 }
  0x60   :  { %224 = vmatpush3.bf16.xpose.msra.mxu0 %v245_v8 }
  0x67   :  { %226 = vmatmul.mubr.bf16.vlgmr.msra.gmra.mrb[0].mxu0 %v246_v9 }
 0x13a   :  { %v155_v10 = vpop.f32.mrb[0].mxu0 }
 0x13b   :  { %171 = vst [vmem:[#allocation8] sm:$0xff] %v155_v10  ;;  %v227_v11 = vpop.f32.mrb[1].mxu0 }
 0x13c   :  { %v158_v12 = vpop.f32.mrb[2].mxu0 }
 0x13d   :  { %172 = vst [vmem:[#allocation8 + $0x8] sm:$0xff] %v158_v12  ;;  %v228_v13 = vpop.f32.mrb[3].mxu0 }
 0x13e   :  { %302 = shalt.err (!%p299_p6)
}
 0x13f   :  { %s303_s10 = scalar_lea.hbm %s381_s2, 256 }
 0x140   :  { %p304_p7 = scmp.ne.s32.totalorder %s381_s2, %s303_s10  ;;  %p307_p8 = scmp.lt.u32.totalorder %s303_s10, %s381_s2 }
 0x142   :  { %p309_p9 = pnand %p307_p8, %p304_p7 }
 0x144   :  { %312 = shalt.err (!%p309_p9)
}
 0x145   :  { %s326_s15 = smov 128   ;;  %s327_s16 = smov 8  }
 0x146   :  { %184 = dma.vmem_to_hbm [thread:$0]  %s179_s6, 256, %s381_s2, [#allocation5], %s326_s15, %s326_s15, %s327_s16  }
 0x147   :  { %317 = dma.done.wait [#allocation5], 256  }
 0x148   :  { %318 = vsyncadd [#allocation5], 4294967040 }
 0x149   :  { %188 = vsyncpa [#allocation4], 1 }
 0x14a   :  { %189 = vsyncpa [#allocation7], 1 }
 0x14b   :  { %190 = vsyncpa [#allocation5], 1 }

</bundles_post_ra>
